<compile_context>
chip_gen: v5e
topology: v5e:2x2
jax: 0.10.0
libtpu: 0.0.40
codegen_flags: <defaults>
</compile_context>

<pallas_src>
import functools
import math

import jax
import jax.numpy as jnp
from jax.experimental import pallas as pl
from jax.experimental.pallas import tpu as pltpu

LANE = 128
SUB = 8                       # f32 sublane tile
CHUNK_ROWS = 64               # sub-chunk rows: 8 f32 vregs per input per chunk
MAX_BLOCK_ROWS = 2048         # 2048 x 128 f32 = 1 MiB per input per buffer
MIN_BLOCK_ROWS = CHUNK_ROWS   # tiny inputs are padded up to one chunk
VMEM_LIMIT_BYTES = 32 * 1024 * 1024   # safe on v5e/v6e (128 MiB) and v7x (64 MiB)


def _dice_partial_kernel(*refs, has_mask, block_rows, rows_total, n_inner,
                         needs_tail_mask):
    """Accumulate per-core partial sums [sum(p*t), sum(p), sum(t)].

    refs = (pred, target[, mask], out)
      out: (1, 3, 8, 128) f32 output block.  Its block index depends only on
      the leading ("parallel") grid axis, so it stays VMEM-resident across the
      inner ("arbitrary") reduction axis and doubles as the accumulator.
    """
    if has_mask:
        pred_ref, target_ref, mask_ref, out_ref = refs
    else:
        pred_ref, target_ref, out_ref = refs
        mask_ref = None

    o = pl.program_id(0)   # parallel (per-core) axis
    i = pl.program_id(1)   # arbitrary (reduction) axis

    @pl.when(i == 0)
    def _init():
        out_ref[...] = jnp.zeros_like(out_ref)

    if needs_tail_mask:
        # Valid-row cutoff for this block (can be <= 0 for duplicated blocks).
        lin = o * n_inner + i
        cutoff = rows_total - lin * block_rows
        # Loop-invariant local iota, hoisted out of the chunk loop; per chunk
        # the mask costs one scalar subtract + one compare + two selects/vreg.
        local_iota = jax.lax.broadcasted_iota(jnp.int32, (CHUNK_ROWS, LANE), 0)

    n_chunks = block_rows // CHUNK_ROWS

    def chunk_body(c, carry):
        a_pt, a_p, a_t = carry
        start = pl.multiple_of(c * CHUNK_ROWS, CHUNK_ROWS)
        p = pred_ref[pl.ds(start, CHUNK_ROWS), :].astype(jnp.float32)
        t = target_ref[pl.ds(start, CHUNK_ROWS), :].astype(jnp.float32)
        if has_mask:
            m = mask_ref[pl.ds(start, CHUNK_ROWS), :].astype(jnp.float32)
            p = p * m
            t = t * m
        if needs_tail_mask:
            valid = local_iota < (cutoff - start)
            p = jnp.where(valid, p, 0.0)
            t = jnp.where(valid, t, 0.0)
        # Fold (64, 128) -> (8, 128) with pure VPU adds (sublane split at a
        # multiple of 8 is layout-free).
        g = CHUNK_ROWS // SUB
        a_pt = a_pt + jnp.sum((p * t).reshape(g, SUB, LANE), axis=0)
        a_p = a_p + jnp.sum(p.reshape(g, SUB, LANE), axis=0)
        a_t = a_t + jnp.sum(t.reshape(g, SUB, LANE), axis=0)
        return a_pt, a_p, a_t

    zero = jnp.zeros((SUB, LANE), jnp.float32)
    a_pt, a_p, a_t = jax.lax.fori_loop(
        0, n_chunks, chunk_body, (zero, zero, zero), unroll=True)

    out_ref[0, 0, :, :] += a_pt
    out_ref[0, 1, :, :] += a_p
    out_ref[0, 2, :, :] += a_t


def _prep(x, rows_padded):
    """Flatten to (rows_padded, 128) in native (floating) dtype.

    Copy-free (pure reshape) when x.size == rows_padded * 128; otherwise zero
    pads the flat tail (zeros do not change any of the three sums).
    """
    if not jnp.issubdtype(x.dtype, jnp.floating):
        x = x.astype(jnp.float32)
    flat = jnp.ravel(x)
    pad = rows_padded * LANE - flat.shape[0]
    if pad:
        flat = jnp.concatenate([flat, jnp.zeros((pad,), flat.dtype)])
    return flat.reshape(rows_padded, LANE)


def dice_loss(pred, target, mask=None, smooth=1.0):
    """Returns (dice_loss, intersection / target.sum()) as f32 scalars."""
    has_mask = mask is not None
    n = math.prod(pred.shape)
    rows = -(-n // LANE)  # ceil

    if rows < MIN_BLOCK_ROWS:
        rows_padded = MIN_BLOCK_ROWS
        block_rows = MIN_BLOCK_ROWS
    else:
        rows_padded = rows
        block_rows = min(MAX_BLOCK_ROWS, (rows // CHUNK_ROWS) * CHUNK_ROWS)

    n_blocks = -(-rows_padded // block_rows)
    # Split the row stream across two partial-sum outputs; on v7x the leading
    # "parallel" axis is sharded across both TensorCores (~2x on this
    # HBM-bound reduction), on v5e/v6e it is just a serial outer loop.
    n_outer = 2 if n_blocks >= 2 else 1
    n_inner = -(-n_blocks // n_outer)
    # Masking is needed if the last block overhangs the array and/or the
    # rectangular grid has a duplicated (index-clamped) block.
    needs_tail_mask = (rows_padded % block_rows != 0) or (n_outer * n_inner != n_blocks)

    inputs = [_prep(pred, rows_padded), _prep(target, rows_padded)]
    if has_mask:
        inputs.append(_prep(mask, rows_padded))

    last_block = n_blocks - 1
    if n_outer * n_inner == n_blocks:
        in_map = lambda o, i: (o * n_inner + i, 0)
    else:
        # Clamp the overhanging grid step onto the last real block; its
        # contribution is zeroed in-kernel (cutoff <= 0).
        in_map = lambda o, i: (jnp.minimum(o * n_inner + i, last_block), 0)

    blk = pl.BlockSpec((block_rows, LANE), in_map)
    in_specs = [blk] * len(inputs)

    kernel = functools.partial(
        _dice_partial_kernel,
        has_mask=has_mask,
        block_rows=block_rows,
        rows_total=rows_padded,
        n_inner=n_inner,
        needs_tail_mask=needs_tail_mask,
    )

    partials = pl.pallas_call(
        kernel,
        out_shape=jax.ShapeDtypeStruct((n_outer, 3, SUB, LANE), jnp.float32),
        grid_spec=pltpu.PrefetchScalarGridSpec(
            num_scalar_prefetch=0,
            grid=(n_outer, n_inner),
            in_specs=in_specs,
            out_specs=pl.BlockSpec((1, 3, SUB, LANE),
                                   lambda o, i: (o, 0, 0, 0)),
        ),
        compiler_params=pltpu.CompilerParams(
            dimension_semantics=("parallel", "arbitrary"),
            vmem_limit_bytes=VMEM_LIMIT_BYTES),
    )(*inputs)

    # Trivial follow-up math on the (n_outer, 3, 8, 128) partial sums.
    sums = jnp.sum(partials, axis=(0, 2, 3))
    inter, p_sum, t_sum = sums[0], sums[1], sums[2]
    smooth = jnp.float32(smooth)
    dice = (2.0 * inter + smooth) / (p_sum + t_sum + smooth)
    return 1.0 - dice, inter / t_sum


def _reference(pred, target, mask=None, smooth=1.0):
    pred = pred.astype(jnp.float32)
    target = target.astype(jnp.float32)
    if mask is not None:
        m = mask.astype(jnp.float32)
        pred = pred * m
        target = target * m
    pred = pred.reshape(-1)
    target = target.reshape(-1)
    inter = jnp.sum(pred * target)
    union = jnp.sum(pred) + jnp.sum(target)
    dice = (2.0 * inter + smooth) / (union + smooth)
    return 1.0 - dice, inter / jnp.sum(target)


def _check(pred, target, mask, smooth=1.0, atol=1e-5, rtol=1e-4):
    loss, ratio = dice_loss(pred, target, mask, smooth=smooth)
    jax.block_until_ready((loss, ratio))
    ref_loss, ref_ratio = _reference(pred, target, mask, smooth=smooth)
    assert jnp.allclose(loss, ref_loss, atol=atol, rtol=rtol), (loss, ref_loss)
    assert jnp.allclose(ratio, ref_ratio, atol=atol, rtol=rtol), (ratio, ref_ratio)


if __name__ == "__main__":
    key = jax.random.PRNGKey(0)
    k1, k2, k3, k4, k5, k6, k7, k8, k9 = jax.random.split(key, 9)

    # (N, C, H, W) = (2, 4, 16, 16) — matches the module's expected layout.
    pred = jax.nn.sigmoid(jax.random.normal(k1, (2, 4, 16, 16), jnp.float32))
    target = (jax.random.uniform(k2, (2, 4, 16, 16)) > 0.5).astype(jnp.float32)
    mask = (jax.random.uniform(k3, (2, 4, 16, 16)) > 0.2).astype(jnp.float32)

    # f32, with mask (single block, padded).
    _check(pred, target, mask, smooth=1.0)
    # f32, mask=None (2-input kernel variant).
    _check(pred, target, None, smooth=1.0)
    # bf16 inputs streamed in native dtype, cast to f32 inside the kernel.
    _check(pred.astype(jnp.bfloat16), target.astype(jnp.bfloat16),
           mask.astype(jnp.bfloat16), smooth=1.0)

    # (N, H, W) input: rows=162 -> block_rows=128, n_blocks=2, two-way
    # parallel split with a partial (tail-masked) last block.
    pred2 = jax.nn.sigmoid(jax.random.normal(k4, (1, 144, 144), jnp.float32))
    target2 = (jax.random.uniform(k5, (1, 144, 144)) > 0.5).astype(jnp.float32)
    mask2 = (jax.random.uniform(k6, (1, 144, 144)) > 0.2).astype(jnp.float32)
    _check(pred2, target2, mask2, smooth=1.0)
    _check(pred2, target2, None, smooth=1.0)

    # Larger case: rows=5000 -> block_rows=2048, n_blocks=3, grid (2, 2) with a
    # clamped duplicate block + partial tail (exercises the multi-step inner
    # loop and the duplicate-block masking).
    pred3 = jax.nn.sigmoid(jax.random.normal(k7, (1, 800, 800), jnp.float32))
    target3 = (jax.random.uniform(k8, (1, 800, 800)) > 0.5).astype(jnp.float32)
    mask3 = (jax.random.uniform(k9, (1, 800, 800)) > 0.2).astype(jnp.float32)
    _check(pred3, target3, mask3, smooth=1.0)
    _check(pred3, target3, None, smooth=1.0)

    print("KERNEL_OK")
</pallas_src>

<mosaic_0001>
module attributes {stable_mosaic.version = 11 : i64} {
  func.func @_dice_partial_kernel(%arg0: i32, %arg1: i32, %arg2: memref<64x128xf32, #tpu.memory_space<vmem>>, %arg3: memref<64x128xf32, #tpu.memory_space<vmem>>, %arg4: memref<64x128xf32, #tpu.memory_space<vmem>>, %arg5: memref<1x3x8x128xf32, #tpu.memory_space<vmem>>) attributes {dimension_semantics = [#tpu.dimension_semantics<parallel>, #tpu.dimension_semantics<arbitrary>], iteration_bounds = array<i64: 1, 1>, scalar_prefetch = 0 : i64, scratch_operands = 0 : i64, tpu.core_type = #tpu.core_type<tc>, window_params = [{transform_indices = @transform_0, window_bounds = array<i64: 64, 128>}, {transform_indices = @transform_1, window_bounds = array<i64: 64, 128>}, {transform_indices = @transform_2, window_bounds = array<i64: 64, 128>}, {transform_indices = @transform_3, window_bounds = array<i64: 1, 3, 8, 128>}]} {
    %c0_i32 = arith.constant 0 : i32
    %0 = arith.cmpi eq, %arg1, %c0_i32 : i32
    %1 = arith.extui %0 : i1 to i32
    %c0_i32_0 = arith.constant 0 : i32
    %2 = arith.cmpi ne, %1, %c0_i32_0 : i32
    scf.if %2 {
      %cst_29 = arith.constant 0.000000e+00 : f32
      %42 = vector.broadcast %cst_29 : f32 to vector<1x3x8x128xf32>
      %c0_30 = arith.constant 0 : index
      %c0_31 = arith.constant 0 : index
      %c0_32 = arith.constant 0 : index
      %c0_33 = arith.constant 0 : index
      %43 = vector.load %arg5[%c0_30, %c0_31, %c0_32, %c0_33] : memref<1x3x8x128xf32, #tpu.memory_space<vmem>>, vector<1x3x8x128xf32>
      tpu.vector_store %arg5[%c0_30, %c0_31, %c0_32, %c0_33], %42 {strides = array<i32>} : memref<1x3x8x128xf32, #tpu.memory_space<vmem>>, vector<1x3x8x128xf32>,
    } else {
    }
    %cst = arith.constant 0.000000e+00 : f32
    %3 = vector.broadcast %cst : f32 to vector<8x128xf32>
    %c0_i32_1 = arith.constant 0 : i32
    %c64_i32 = arith.constant 64 : i32
    %4 = arith.muli %c0_i32_1, %c64_i32 : i32
    %5 = tpu.assume_multiple %4, 64 : i32
    %6 = arith.index_cast %5 : i32 to index
    %c0 = arith.constant 0 : index
    %7 = vector.load %arg2[%6, %c0] : memref<64x128xf32, #tpu.memory_space<vmem>>, vector<64x128xf32>
    %8 = arith.index_cast %5 : i32 to index
    %c0_2 = arith.constant 0 : index
    %9 = vector.load %arg3[%8, %c0_2] : memref<64x128xf32, #tpu.memory_space<vmem>>, vector<64x128xf32>
    %10 = arith.index_cast %5 : i32 to index
    %c0_3 = arith.constant 0 : index
    %11 = vector.load %arg4[%10, %c0_3] : memref<64x128xf32, #tpu.memory_space<vmem>>, vector<64x128xf32>
    %12 = arith.mulf %7, %11 : vector<64x128xf32>
    %13 = arith.mulf %9, %11 : vector<64x128xf32>
    %14 = arith.mulf %12, %13 : vector<64x128xf32>
    %15 = vector.shape_cast %14 : vector<64x128xf32> to vector<8x8x128xf32>
    %cst_4 = arith.constant dense<0.000000e+00> : vector<8x128xf32>
    %16 = vector.multi_reduction <add>, %15, %cst_4 [0] : vector<8x8x128xf32> to vector<8x128xf32>
    %17 = arith.addf %3, %16 : vector<8x128xf32>
    %18 = vector.shape_cast %12 : vector<64x128xf32> to vector<8x8x128xf32>
    %cst_5 = arith.constant dense<0.000000e+00> : vector<8x128xf32>
    %19 = vector.multi_reduction <add>, %18, %cst_5 [0] : vector<8x8x128xf32> to vector<8x128xf32>
    %20 = arith.addf %3, %19 : vector<8x128xf32>
    %21 = vector.shape_cast %13 : vector<64x128xf32> to vector<8x8x128xf32>
    %cst_6 = arith.constant dense<0.000000e+00> : vector<8x128xf32>
    %22 = vector.multi_reduction <add>, %21, %cst_6 [0] : vector<8x8x128xf32> to vector<8x128xf32>
    %23 = arith.addf %3, %22 : vector<8x128xf32>
    %c1_i32 = arith.constant 1 : i32
    %c0_7 = arith.constant 0 : index
    %c0_8 = arith.constant 0 : index
    %c0_9 = arith.constant 0 : index
    %c0_10 = arith.constant 0 : index
    %24 = vector.load %arg5[%c0_7, %c0_8, %c0_9, %c0_10] : memref<1x3x8x128xf32, #tpu.memory_space<vmem>>, vector<1x1x8x128xf32>
    %25 = vector.shape_cast %24 : vector<1x1x8x128xf32> to vector<8x128xf32>
    %26 = arith.addf %25, %17 : vector<8x128xf32>
    %c0_11 = arith.constant 0 : index
    %c0_12 = arith.constant 0 : index
    %c0_13 = arith.constant 0 : index
    %c0_14 = arith.constant 0 : index
    %27 = vector.load %arg5[%c0_11, %c0_12, %c0_13, %c0_14] : memref<1x3x8x128xf32, #tpu.memory_space<vmem>>, vector<1x1x8x128xf32>
    %28 = vector.shape_cast %27 : vector<1x1x8x128xf32> to vector<8x128xf32>
    %29 = vector.shape_cast %26 : vector<8x128xf32> to vector<1x1x8x128xf32>
    tpu.vector_store %arg5[%c0_11, %c0_12, %c0_13, %c0_14], %29 {strides = array<i32>} : memref<1x3x8x128xf32, #tpu.memory_space<vmem>>, vector<1x1x8x128xf32>,
    %c0_15 = arith.constant 0 : index
    %c1 = arith.constant 1 : index
    %c0_16 = arith.constant 0 : index
    %c0_17 = arith.constant 0 : index
    %30 = vector.load %arg5[%c0_15, %c1, %c0_16, %c0_17] : memref<1x3x8x128xf32, #tpu.memory_space<vmem>>, vector<1x1x8x128xf32>
    %31 = vector.shape_cast %30 : vector<1x1x8x128xf32> to vector<8x128xf32>
    %32 = arith.addf %31, %20 : vector<8x128xf32>
    %c0_18 = arith.constant 0 : index
    %c1_19 = arith.constant 1 : index
    %c0_20 = arith.constant 0 : index
    %c0_21 = arith.constant 0 : index
    %33 = vector.load %arg5[%c0_18, %c1_19, %c0_20, %c0_21] : memref<1x3x8x128xf32, #tpu.memory_space<vmem>>, vector<1x1x8x128xf32>
    %34 = vector.shape_cast %33 : vector<1x1x8x128xf32> to vector<8x128xf32>
    %35 = vector.shape_cast %32 : vector<8x128xf32> to vector<1x1x8x128xf32>
    tpu.vector_store %arg5[%c0_18, %c1_19, %c0_20, %c0_21], %35 {strides = array<i32>} : memref<1x3x8x128xf32, #tpu.memory_space<vmem>>, vector<1x1x8x128xf32>,
    %c0_22 = arith.constant 0 : index
    %c2 = arith.constant 2 : index
    %c0_23 = arith.constant 0 : index
    %c0_24 = arith.constant 0 : index
    %36 = vector.load %arg5[%c0_22, %c2, %c0_23, %c0_24] : memref<1x3x8x128xf32, #tpu.memory_space<vmem>>, vector<1x1x8x128xf32>
    %37 = vector.shape_cast %36 : vector<1x1x8x128xf32> to vector<8x128xf32>
    %38 = arith.addf %37, %23 : vector<8x128xf32>
    %c0_25 = arith.constant 0 : index
    %c2_26 = arith.constant 2 : index
    %c0_27 = arith.constant 0 : index
    %c0_28 = arith.constant 0 : index
    %39 = vector.load %arg5[%c0_25, %c2_26, %c0_27, %c0_28] : memref<1x3x8x128xf32, #tpu.memory_space<vmem>>, vector<1x1x8x128xf32>
    %40 = vector.shape_cast %39 : vector<1x1x8x128xf32> to vector<8x128xf32>
    %41 = vector.shape_cast %38 : vector<8x128xf32> to vector<1x1x8x128xf32>
    tpu.vector_store %arg5[%c0_25, %c2_26, %c0_27, %c0_28], %41 {strides = array<i32>} : memref<1x3x8x128xf32, #tpu.memory_space<vmem>>, vector<1x1x8x128xf32>,
    return
  }
  func.func @transform_0(%arg0: i32, %arg1: i32) -> (i32, i32) {
    %c1_i32 = arith.constant 1 : i32
    %0 = arith.muli %arg0, %c1_i32 : i32
    %1 = arith.addi %0, %arg1 : i32
    %c0_i32 = arith.constant 0 : i32
    %c0_i32_0 = arith.constant 0 : i32
    return %1, %c0_i32 : i32, i32
  }
  func.func @transform_1(%arg0: i32, %arg1: i32) -> (i32, i32) {
    %c1_i32 = arith.constant 1 : i32
    %0 = arith.muli %arg0, %c1_i32 : i32
    %1 = arith.addi %0, %arg1 : i32
    %c0_i32 = arith.constant 0 : i32
    %c0_i32_0 = arith.constant 0 : i32
    return %1, %c0_i32 : i32, i32
  }
  func.func @transform_2(%arg0: i32, %arg1: i32) -> (i32, i32) {
    %c1_i32 = arith.constant 1 : i32
    %0 = arith.muli %arg0, %c1_i32 : i32
    %1 = arith.addi %0, %arg1 : i32
    %c0_i32 = arith.constant 0 : i32
    %c0_i32_0 = arith.constant 0 : i32
    return %1, %c0_i32 : i32, i32
  }
  func.func @transform_3(%arg0: i32, %arg1: i32) -> (i32, i32, i32, i32) {
    %c0_i32 = arith.constant 0 : i32
    %c0_i32_0 = arith.constant 0 : i32
    %c0_i32_1 = arith.constant 0 : i32
    %c0_i32_2 = arith.constant 0 : i32
    return %arg0, %c0_i32, %c0_i32_0, %c0_i32_1 : i32, i32, i32, i32
  }
}

</mosaic_0001>

<bundles_post_ra>
// kernel: tpu_custom_call.1
= control target key start
LH: loop header
LB: loop body
LE: loop exit
PB: predicated region body
PF: predicated region fallthrough
CT: control target
= control target key end

     0   :  { %8 = vsyncpa [#allocation3], 0  ;;  %s349_s0 = inlined_call_operand.hbm [shape: f32[64,128], index: 0, kind: input, shape index: {}]   ;;  %s350_s1 = inlined_call_operand.hbm [shape: f32[64,128], index: 1, kind: input, shape index: {}]   ;;  %s351_s2 = inlined_call_operand.hbm [shape: f32[64,128], index: 2, kind: input, shape index: {}]   ;;  %s352_s3 = inlined_call_operand.hbm [shape: f32[1,3,8,128], index: 3, kind: output, shape index: {}]  }
   0x1   :  { %9 = vsyncpa [#allocation6], 0 }
   0x2   :  { %10 = vsyncpa [#allocation4], 0  ;;  %s36_s14 = sshll.u32 %s350_s1, 4  ;;  %s299_s15 = smov [#allocation5]   ;;  %s37_s14 = int_to_ptr.hbm [resolvable:$true] %s36_s14 }
   0x3   :  { %s38_s16 = sshll.u32 %s299_s15, 4  ;;  %s19_s19 = sshll.u32 %s349_s0, 4  ;;  %s39_s16 = int_to_ptr.vmem [resolvable:$true] %s38_s16  ;;  %s20_s19 = int_to_ptr.hbm [resolvable:$true] %s19_s19 }
   0x4   :  { %s300_s20 = smov 128   ;;  %s301_s21 = smov 8  }
   0x5   :  { %44 = dma.hbm_to_vmem [thread:$0]  %s37_s14, 1024, %s39_s16, [#allocation6], %s300_s20, %s300_s20, %s301_s21  }
   0x6   :  { %s302_s22 = smov [#allocation2]   ;;  %s53_s1 = sshll.u32 %s351_s2, 4  ;;  %s54_s1 = int_to_ptr.hbm [resolvable:$true] %s53_s1 }
   0x7   :  { %s21_s23 = sshll.u32 %s302_s22, 4  ;;  %s303_s0 = smov [#allocation7]   ;;  %s22_s23 = int_to_ptr.vmem [resolvable:$true] %s21_s23 }
   0x8   :  { %27 = dma.hbm_to_vmem [thread:$0]  %s20_s19, 1024, %s22_s23, [#allocation3], %s300_s20, %s300_s20, %s301_s21  }
   0x9   :  { %s55_s26 = sshll.u32 %s303_s0, 4  ;;  %s56_s26 = int_to_ptr.vmem [resolvable:$true] %s55_s26 }
   0xa   :  { %61 = dma.hbm_to_vmem [thread:$0]  %s54_s1, 1024, %s56_s26, [#allocation6], %s300_s20, %s300_s20, %s301_s21  }
   0xb   :  { %293 = dma.done.wait [#allocation3], 1024  }
   0xc   :  { %294 = vsyncadd [#allocation3], 4294966272 }
   0xd   :  { %295 = dma.done.wait [#allocation6], 2048  }
   0xe   :  { %296 = vsyncadd [#allocation6], 4294965248  ;;  %v87_v0 = vld [vmem:[#allocation2] sm:$0xff]  ;;  %v88_v1 = vld [vmem:[#allocation2 + $0x8] sm:$0xff]  ;;  %s304_s2 = smov [#allocation8]   ;;  %s176_s30 = sshll.u32 %s352_s3, 4  ;;  %s177_s30 = int_to_ptr.hbm [resolvable:$true] %s176_s30 }
   0xf   :  { %v89_v2 = vld [vmem:[#allocation2 + $0x10] sm:$0xff]  ;;  %v95_v3 = vld [vmem:[#allocation5] sm:$0xff]  ;;  %v96_v4 = vld [vmem:[#allocation5 + $0x8] sm:$0xff]  ;;  %s174_s27 = sshll.u32 %s304_s2, 4  ;;  %s175_s27 = int_to_ptr.vmem [resolvable:$true] %s174_s27 }
  0x10   :  { %v90_v5 = vld [vmem:[#allocation2 + $0x18] sm:$0xff]  ;;  %v91_v6 = vld [vmem:[#allocation2 + $0x20] sm:$0xff]  ;;  %v97_v7 = vld [vmem:[#allocation5 + $0x10] sm:$0xff] }
  0x11   :  { %v98_v8 = vld [vmem:[#allocation5 + $0x18] sm:$0xff]  ;;  %v103_v9 = vld [vmem:[#allocation7] sm:$0xff]  ;;  %v104_v10 = vld [vmem:[#allocation7 + $0x8] sm:$0xff] }
  0x12   :  { %v105_v11 = vld [vmem:[#allocation7 + $0x10] sm:$0xff]  ;;  %v106_v12 = vld [vmem:[#allocation7 + $0x18] sm:$0xff]  ;;  %v107_v13 = vld [vmem:[#allocation7 + $0x20] sm:$0xff]  ;;  %v111_v14 = vmul.f32 %v103_v9, %v87_v0  ;;  %v112_v15 = vmul.f32 %v104_v10, %v88_v1  ;;  %v119_v16 = vmul.f32 %v103_v9, %v95_v3  ;;  %v120_v17 = vmul.f32 %v104_v10, %v96_v4 }
  0x13   :  { %v99_v18 = vld [vmem:[#allocation5 + $0x20] sm:$0xff]  ;;  %v113_v19 = vmul.f32 %v105_v11, %v89_v2  ;;  %v121_v20 = vmul.f32 %v105_v11, %v97_v7  ;;  %v92_v21 = vld [vmem:[#allocation2 + $0x28] sm:$0xff]  ;;  %v114_v24 = vmul.f32 %v106_v12, %v90_v5  ;;  %v122_v25 = vmul.f32 %v106_v12, %v98_v8  ;;  %v93_v27 = vld [vmem:[#allocation2 + $0x30] sm:$0xff] }
  0x14   :  { %v100_v22 = vld [vmem:[#allocation5 + $0x28] sm:$0xff]  ;;  %v115_v26 = vmul.f32 %v107_v13, %v91_v6  ;;  %v101_v28 = vld [vmem:[#allocation5 + $0x30] sm:$0xff]  ;;  %v123_v30 = vmul.f32 %v107_v13, %v99_v18  ;;  %v127_v31 = vmul.f32 %v119_v16, %v111_v14  ;;  %v128_v32 = vmul.f32 %v120_v17, %v112_v15  ;;  %v94_v36 = vld [vmem:[#allocation2 + $0x38] sm:$0xff] }
  0x15   :  { %v108_v23 = vld [vmem:[#allocation7 + $0x28] sm:$0xff]  ;;  %v109_v29 = vld [vmem:[#allocation7 + $0x30] sm:$0xff]  ;;  %v129_v33 = vmul.f32 %v121_v20, %v113_v19  ;;  %v102_v37 = vld [vmem:[#allocation5 + $0x38] sm:$0xff]  ;;  %v130_v39 = vmul.f32 %v122_v25, %v114_v24  ;;  %v143_v41 = vadd.f32 %v112_v15, %v111_v14  ;;  %v151_v42 = vadd.f32 %v120_v17, %v119_v16 }
  0x16   :  { %v116_v34 = vmul.f32 %v108_v23, %v92_v21  ;;  %v124_v35 = vmul.f32 %v108_v23, %v100_v22  ;;  %v110_v38 = vld [vmem:[#allocation7 + $0x38] sm:$0xff]  ;;  %v135_v40 = vadd.f32 %v128_v32, %v127_v31  ;;  %v117_v43 = vmul.f32 %v109_v29, %v93_v27 }
  0x17   :  { %v125_v44 = vmul.f32 %v109_v29, %v101_v28  ;;  %v131_v45 = vmul.f32 %v123_v30, %v115_v26  ;;  %v144_v47 = vadd.f32 %v143_v41, %v113_v19  ;;  %v152_v48 = vadd.f32 %v151_v42, %v121_v20 }
  0x18   :  { %v136_v46 = vadd.f32 %v135_v40, %v129_v33  ;;  %v118_v49 = vmul.f32 %v110_v38, %v94_v36  ;;  %v126_v50 = vmul.f32 %v110_v38, %v102_v37  ;;  %v132_v51 = vmul.f32 %v124_v35, %v116_v34 }
  0x19   :  { %v145_v53 = vadd.f32 %v144_v47, %v114_v24  ;;  %v153_v54 = vadd.f32 %v152_v48, %v122_v25  ;;  %v133_v55 = vmul.f32 %v125_v44, %v117_v43 }
  0x1a   :  { %v137_v52 = vadd.f32 %v136_v46, %v130_v39  ;;  %v134_v59 = vmul.f32 %v126_v50, %v118_v49 }
  0x1b   :  { %v146_v57 = vadd.f32 %v145_v53, %v115_v26  ;;  %v154_v58 = vadd.f32 %v153_v54, %v123_v30 }
  0x1c   :  { %v138_v56 = vadd.f32 %v137_v52, %v131_v45 }
  0x1d   :  { %v147_v61 = vadd.f32 %v146_v57, %v116_v34  ;;  %v155_v62 = vadd.f32 %v154_v58, %v124_v35 }
  0x1e   :  { %v139_v60 = vadd.f32 %v138_v56, %v132_v51 }
  0x1f   :  { %v148_v0 = vadd.f32 %v147_v61, %v117_v43  ;;  %v156_v1 = vadd.f32 %v155_v62, %v125_v44 }
  0x20   :  { %v140_v63 = vadd.f32 %v139_v60, %v133_v55 }
  0x21   :  { %v149_v3 = vadd.f32 %v148_v0, %v118_v49  ;;  %v157_v4 = vadd.f32 %v156_v1, %v126_v50 }
  0x22   :  { %v141_v2 = vadd.f32 %v140_v63, %v134_v59 }
  0x23   :  { %165 = vst [vmem:[#allocation8 + $0x8] sm:$0xff] %v149_v3 }
  0x24   :  { %161 = vst [vmem:[#allocation8] sm:$0xff] %v141_v2 }
  0x25   :  { %169 = vst [vmem:[#allocation8 + $0x10] sm:$0xff] %v157_v4 }
  0x26   :  { %182 = dma.vmem_to_hbm [thread:$0]  %s175_s27, 384, %s177_s30, [#allocation4], %s300_s20, %s300_s20, %s301_s21  }
  0x27   :  { %297 = dma.done.wait [#allocation4], 384  }
  0x28   :  { %298 = vsyncadd [#allocation4], 4294966912 }
  0x29   :  { %187 = vsyncpa [#allocation3], 1 }
  0x2a   :  { %188 = vsyncpa [#allocation6], 1 }
  0x2b   :  { %189 = vsyncpa [#allocation4], 1 }

</bundles_post_ra>
